<compile_context>
chip_gen: v7x
topology: tpu7x:2x2x1
jax: 0.10.0
libtpu: 0.0.40
codegen_flags: <defaults>
</compile_context>

<pallas_src>
import jax
import jax.numpy as jnp
from jax import lax
from jax.experimental import pallas as pl
from jax.experimental.pallas import tpu as pltpu

N = 2          # x1 is (N, N)
ITERS = 10     # loop trip count in the PyTorch module
LANES = 128    # TPU lane width -> lane-dense output slab


def _batched_kernel(x_ref, noise_ref, o_ref):
    """All 10 loop iterations in one invocation, VPU-only.

    x_ref:     (4,)       f32 in SMEM, row-major entries of x1
    noise_ref: (N, LANES) f32 in VMEM; row r, lane i = noise_i[r] (zeros past ITERS)
    o_ref:     (4, LANES) f32 in VMEM; rows = a, b, c, d where v_i^16 = [[a,b],[c,d]]
    """
    x00 = x_ref[0]
    x01 = x_ref[1]
    x10 = x_ref[2]
    x11 = x_ref[3]
    n0 = noise_ref[0:1, :]            # (1, LANES): noise added to column 0
    n1 = noise_ref[1:2, :]            # (1, LANES): noise added to column 1

    # v_i = x1 + (x1 + noise_i) = 2*x1 + noise_i, noise_i broadcast over rows.
    a = 2.0 * x00 + n0                # lane i holds entry [0,0] of v_i
    b = 2.0 * x01 + n1                # entry [0,1]
    c = 2.0 * x10 + n0                # entry [1,0]
    d = 2.0 * x11 + n1                # entry [1,1]

    # Four chained self-matmuls -> v^16, as explicit 2x2 squarings on the VPU
    # (all 10 iterations ride in the lanes of a single vreg; no MXU).
    for _ in range(4):
        bc = b * c
        t = a + d
        a, b, c, d = a * a + bc, b * t, c * t, d * d + bc

    # Single coalesced, unmasked (4, LANES) store (no per-row vst.msk).
    row = lax.broadcasted_iota(jnp.int32, (4, LANES), 0)
    packed = jnp.where(row == 0, a,
             jnp.where(row == 1, b,
             jnp.where(row == 2, c, d)))
    o_ref[...] = packed


@jax.jit
def model_forward(x1: jax.Array, noise: jax.Array) -> jax.Array:
    """x1: (N, N) f32, noise: (ITERS, 1, N) f32  ->  (ITERS*N, N) f32."""
    # Layout plumbing fuses under jit: lane-dense (N, 128) noise slab,
    # lane i carries iteration i's noise row; x1 flattened for 1-D SMEM.
    noise_t = noise.reshape(ITERS, N).T                                  # (N, ITERS)
    noise_slab = jnp.zeros((N, LANES), jnp.float32).at[:, :ITERS].set(noise_t)
    x_flat = x1.reshape(-1).astype(jnp.float32)                          # (4,)

    packed = pl.pallas_call(
        _batched_kernel,
        out_shape=jax.ShapeDtypeStruct((4, LANES), jnp.float32),
        in_specs=[
            pl.BlockSpec(memory_space=pltpu.MemorySpace.SMEM),   # x1: 4 scalars
            pl.BlockSpec(memory_space=pltpu.MemorySpace.VMEM),   # noise slab
        ],
        out_specs=pl.BlockSpec(memory_space=pltpu.MemorySpace.VMEM),
        cost_estimate=pl.CostEstimate(
            flops=1200, transcendentals=0, bytes_accessed=3 * 1024),
    )(x_flat, noise_slab)

    # packed rows a, b, c, d (per lane i) -> per-iteration matrix [[a,b],[c,d]];
    # torch.cat(tensorList, 0) over ITERS (2,2) matrices == (ITERS*N, N).
    abcd = packed[:, :ITERS]                                             # (4, ITERS)
    return abcd.T.reshape(ITERS * N, N)


if __name__ == "__main__":
    key = jax.random.PRNGKey(0)
    k_x, k_noise = jax.random.split(key)

    x1 = jax.random.normal(k_x, (N, N), dtype=jnp.float32)
    # one fresh random row per loop iteration (stands in for torch.randn per-iter)
    noise = jax.random.normal(k_noise, (ITERS, 1, N), dtype=jnp.float32)

    y = model_forward(x1, noise)
    y = jax.block_until_ready(y)

    # lightweight sanity check against a pure-JAX reference (f32 port, not f64)
    def ref(x1, noise):
        outs = []
        for i in range(ITERS):
            v = x1 + (x1 + noise[i])            # (1, N) broadcasts over rows
            for _ in range(4):
                v = v @ v
            outs.append(v)
        return jnp.concatenate(outs, axis=0)

    y_ref = ref(x1, noise)
    assert y.shape == (ITERS * N, N) and y.dtype == jnp.float32
    rel_err = jnp.max(jnp.abs(y - y_ref)) / (jnp.max(jnp.abs(y_ref)) + 1e-6)
    assert rel_err < 1e-3, f"rel_err={rel_err}"

    print("KERNEL_OK")
</pallas_src>

<mosaic_0001>
module attributes {stable_mosaic.version = 11 : i64} {
  func.func @_batched_kernel(%arg0: memref<4xf32, #tpu.memory_space<smem>>, %arg1: memref<2x128xf32, #tpu.memory_space<vmem>>, %arg2: memref<4x128xf32, #tpu.memory_space<vmem>>) attributes {dimension_semantics = [], scalar_prefetch = 0 : i64, scratch_operands = 0 : i64, tpu.core_type = #tpu.core_type<tc>} {
    %c0 = arith.constant 0 : index
    %0 = memref.load %arg0[%c0] : memref<4xf32, #tpu.memory_space<smem>>
    %c1 = arith.constant 1 : index
    %1 = memref.load %arg0[%c1] : memref<4xf32, #tpu.memory_space<smem>>
    %c2 = arith.constant 2 : index
    %2 = memref.load %arg0[%c2] : memref<4xf32, #tpu.memory_space<smem>>
    %c3 = arith.constant 3 : index
    %3 = memref.load %arg0[%c3] : memref<4xf32, #tpu.memory_space<smem>>
    %c0_0 = arith.constant 0 : index
    %c0_1 = arith.constant 0 : index
    %4 = vector.load %arg1[%c0_0, %c0_1] : memref<2x128xf32, #tpu.memory_space<vmem>>, vector<1x128xf32>
    %c1_2 = arith.constant 1 : index
    %c0_3 = arith.constant 0 : index
    %5 = vector.load %arg1[%c1_2, %c0_3] : memref<2x128xf32, #tpu.memory_space<vmem>>, vector<1x128xf32>
    %cst = arith.constant 2.000000e+00 : f32
    %6 = arith.mulf %cst, %0 : f32
    %7 = vector.broadcast %6 : f32 to vector<1x128xf32>
    %8 = arith.addf %7, %4 : vector<1x128xf32>
    %cst_4 = arith.constant 2.000000e+00 : f32
    %9 = arith.mulf %cst_4, %1 : f32
    %10 = vector.broadcast %9 : f32 to vector<1x128xf32>
    %11 = arith.addf %10, %5 : vector<1x128xf32>
    %cst_5 = arith.constant 2.000000e+00 : f32
    %12 = arith.mulf %cst_5, %2 : f32
    %13 = vector.broadcast %12 : f32 to vector<1x128xf32>
    %14 = arith.addf %13, %4 : vector<1x128xf32>
    %cst_6 = arith.constant 2.000000e+00 : f32
    %15 = arith.mulf %cst_6, %3 : f32
    %16 = vector.broadcast %15 : f32 to vector<1x128xf32>
    %17 = arith.addf %16, %5 : vector<1x128xf32>
    %18 = arith.mulf %11, %14 : vector<1x128xf32>
    %19 = arith.addf %8, %17 : vector<1x128xf32>
    %20 = arith.mulf %8, %8 : vector<1x128xf32>
    %21 = arith.addf %20, %18 : vector<1x128xf32>
    %22 = arith.mulf %11, %19 : vector<1x128xf32>
    %23 = arith.mulf %14, %19 : vector<1x128xf32>
    %24 = arith.mulf %17, %17 : vector<1x128xf32>
    %25 = arith.addf %24, %18 : vector<1x128xf32>
    %26 = arith.mulf %22, %23 : vector<1x128xf32>
    %27 = arith.addf %21, %25 : vector<1x128xf32>
    %28 = arith.mulf %21, %21 : vector<1x128xf32>
    %29 = arith.addf %28, %26 : vector<1x128xf32>
    %30 = arith.mulf %22, %27 : vector<1x128xf32>
    %31 = arith.mulf %23, %27 : vector<1x128xf32>
    %32 = arith.mulf %25, %25 : vector<1x128xf32>
    %33 = arith.addf %32, %26 : vector<1x128xf32>
    %34 = arith.mulf %30, %31 : vector<1x128xf32>
    %35 = arith.addf %29, %33 : vector<1x128xf32>
    %36 = arith.mulf %29, %29 : vector<1x128xf32>
    %37 = arith.addf %36, %34 : vector<1x128xf32>
    %38 = arith.mulf %30, %35 : vector<1x128xf32>
    %39 = arith.mulf %31, %35 : vector<1x128xf32>
    %40 = arith.mulf %33, %33 : vector<1x128xf32>
    %41 = arith.addf %40, %34 : vector<1x128xf32>
    %42 = arith.mulf %38, %39 : vector<1x128xf32>
    %43 = arith.addf %37, %41 : vector<1x128xf32>
    %44 = arith.mulf %37, %37 : vector<1x128xf32>
    %45 = arith.addf %44, %42 : vector<1x128xf32>
    %46 = arith.mulf %38, %43 : vector<1x128xf32>
    %47 = arith.mulf %39, %43 : vector<1x128xf32>
    %48 = arith.mulf %41, %41 : vector<1x128xf32>
    %49 = arith.addf %48, %42 : vector<1x128xf32>
    %50 = tpu.iota {dimensions = array<i32: 0>} : vector<4x128xi32>
    %c0_i32 = arith.constant 0 : i32
    %51 = vector.broadcast %c0_i32 : i32 to vector<4x128xi32>
    %52 = arith.cmpi eq, %50, %51 : vector<4x128xi32>
    %c1_i32 = arith.constant 1 : i32
    %53 = vector.broadcast %c1_i32 : i32 to vector<4x128xi32>
    %54 = arith.cmpi eq, %50, %53 : vector<4x128xi32>
    %c2_i32 = arith.constant 2 : i32
    %55 = vector.broadcast %c2_i32 : i32 to vector<4x128xi32>
    %56 = arith.cmpi eq, %50, %55 : vector<4x128xi32>
    %57 = vector.shape_cast %47 : vector<1x128xf32> to vector<1x128xf32>
    %58 = vector.broadcast %57 : vector<1x128xf32> to vector<4x128xf32>
    %59 = vector.shape_cast %49 : vector<1x128xf32> to vector<1x128xf32>
    %60 = vector.broadcast %59 : vector<1x128xf32> to vector<4x128xf32>
    %61 = arith.select %56, %58, %60 : vector<4x128xi1>, vector<4x128xf32>
    %62 = vector.shape_cast %46 : vector<1x128xf32> to vector<1x128xf32>
    %63 = vector.broadcast %62 : vector<1x128xf32> to vector<4x128xf32>
    %64 = arith.select %54, %63, %61 : vector<4x128xi1>, vector<4x128xf32>
    %65 = vector.shape_cast %45 : vector<1x128xf32> to vector<1x128xf32>
    %66 = vector.broadcast %65 : vector<1x128xf32> to vector<4x128xf32>
    %67 = arith.select %52, %66, %64 : vector<4x128xi1>, vector<4x128xf32>
    %c0_7 = arith.constant 0 : index
    %c0_8 = arith.constant 0 : index
    %68 = vector.load %arg2[%c0_7, %c0_8] : memref<4x128xf32, #tpu.memory_space<vmem>>, vector<4x128xf32>
    tpu.vector_store %arg2[%c0_7, %c0_8], %67 {strides = array<i32>} : memref<4x128xf32, #tpu.memory_space<vmem>>, vector<4x128xf32>,
    return
  }
}

</mosaic_0001>

<bundles_post_ra>
// kernel: model_forward.1
= control target key start
LH: loop header
LB: loop body
LE: loop exit
PB: predicated region body
PF: predicated region fallthrough
CT: control target
= control target key end

     0   :  { %7 = vsyncpa [#allocation3], 0  ;;  %s150_s0 = inlined_call_operand.vmem [shape: f32[4], index: 0, kind: input, shape index: {}]   ;;  %s151_s1 = inlined_call_operand.vmem [shape: f32[2,128], index: 1, kind: input, shape index: {}]   ;;  %s152_s2 = inlined_call_operand.vmem [shape: f32[4,128], index: 2, kind: output, shape index: {}]  }
   0x1   :  { %s14_s11 = sshll.u32 %s150_s0, 4  ;;  %s15_s11 = int_to_ptr.vmem [resolvable:$true] %s14_s11 }
   0x2   :  { %s108_s12 = scalar_lea.vmem %s15_s11, 16  ;;  %p113_p1 = scmp.lt.s32.totalorder %s15_s11, %s15_s11 }
   0x3   :  { %p109_p0 = scmp.ne.s32.totalorder %s15_s11, %s108_s12  ;;  %p114_p2 = scmp.lt.s32.totalorder %s108_s12, %s108_s12 }
   0x5   :  { %p115_p3 = por %p114_p2, %p113_p1 }
   0x7   :  { %p116_p4 = pnand %p115_p3, %p109_p0 }
   0x9   :  { %119 = shalt.err (!%p116_p4)
}
   0xa   :  { %s122_s13 = smov [#allocation2]  }
   0xb   :  { %17 = dma.vmem_to_smem %s15_s11, 16, %s122_s13, [#allocation3]  }
   0xc   :  { %120 = dma.done.wait [#allocation3], 16  }
   0xd   :  { %121 = vsyncadd [#allocation3], 4294967280 }
   0xe   :  { %23 = sfence }
   0xf   :  { %s24_s14 = sld [smem:[#allocation2]]  ;;  %s104_s15 = sld [smem:[#allocation2 + $0x1]]  ;;  %v28_v0 = vld [vmem:[%s151_s1] sm:$0x1]  ;;  %v29_v1 = vld [vmem:[%s151_s1 + $0x1] sm:$0x1]  ;;  %v74_v19 = vlaneseq }
  0x10   :  { %s105_s16 = sld [smem:[#allocation2 + $0x2]]  ;;  %s106_s17 = sld [smem:[#allocation2 + $0x3]] }
  0x11   :  { %v75_v27 = vshrl.u32 %v74_v19, 7 }
  0x13   :  { %v81_v36 = vsub.s32 0, %v75_v27  ;;  %vm77_vm0 = vcmp.eq.s32.totalorder %v75_v27, 1  ;;  %vm78_vm1 = vcmp.eq.s32.totalorder %v75_v27, 2  ;;  %vm76_vm2 = vcmp.eq.s32.totalorder %v75_v27, 0 }
  0x15   :  { %s30_s0 = smul.f32 2.0, %s24_s14 }
  0x16   :  { %s33_s22 = smul.f32 2.0, %s104_s15 }
  0x17   :  { %v31_v2 = vstv %s30_s0  ;;  %s36_s23 = smul.f32 2.0, %s105_s16 }
  0x18   :  { %v32_v3 = vadd.f32 %v31_v2, %v28_v0  ;;  %v34_v4 = vstv %s33_s22  ;;  %s39_s24 = smul.f32 2.0, %s106_s17 }
  0x19   :  { %v35_v5 = vadd.f32 %v34_v4, %v29_v1  ;;  %v37_v6 = vstv %s36_s23 }
  0x1a   :  { %v38_v7 = vadd.f32 %v37_v6, %v28_v0  ;;  %v40_v8 = vstv %s39_s24  ;;  %v44_v9 = vmul.f32 %v32_v3, %v32_v3 }
  0x1b   :  { %v41_v10 = vadd.f32 %v40_v8, %v29_v1 }
  0x1c   :  { %v42_v11 = vmul.f32 %v38_v7, %v35_v5 }
  0x1d   :  { %v43_v12 = vadd.f32 %v41_v10, %v32_v3  ;;  %v48_v13 = vmul.f32 %v41_v10, %v41_v10 }
  0x1e   :  { %v45_v14 = vadd.f32 %v44_v9, %v42_v11 }
  0x1f   :  { %v46_v15 = vmul.f32 %v43_v12, %v35_v5  ;;  %v47_v16 = vmul.f32 %v43_v12, %v38_v7  ;;  %v49_v17 = vadd.f32 %v48_v13, %v42_v11 }
  0x20   :  { %v52_v18 = vmul.f32 %v45_v14, %v45_v14 }
  0x21   :  { %v50_v20 = vmul.f32 %v47_v16, %v46_v15  ;;  %v51_v21 = vadd.f32 %v49_v17, %v45_v14  ;;  %v56_v22 = vmul.f32 %v49_v17, %v49_v17 }
  0x23   :  { %v53_v23 = vadd.f32 %v52_v18, %v50_v20  ;;  %v54_v24 = vmul.f32 %v51_v21, %v46_v15  ;;  %v55_v25 = vmul.f32 %v51_v21, %v47_v16  ;;  %v57_v26 = vadd.f32 %v56_v22, %v50_v20 }
  0x25   :  { %v58_v28 = vmul.f32 %v55_v25, %v54_v24  ;;  %v59_v29 = vadd.f32 %v57_v26, %v53_v23  ;;  %v60_v30 = vmul.f32 %v53_v23, %v53_v23  ;;  %v64_v31 = vmul.f32 %v57_v26, %v57_v26 }
  0x27   :  { %v61_v32 = vadd.f32 %v60_v30, %v58_v28  ;;  %v62_v33 = vmul.f32 %v59_v29, %v54_v24  ;;  %v63_v34 = vmul.f32 %v59_v29, %v55_v25  ;;  %v65_v35 = vadd.f32 %v64_v31, %v58_v28 }
  0x29   :  { %v66_v37 = vmul.f32 %v63_v34, %v62_v33  ;;  %v67_v38 = vadd.f32 %v65_v35, %v61_v32  ;;  %v68_v39 = vmul.f32 %v61_v32, %v61_v32  ;;  %v72_v40 = vmul.f32 %v65_v35, %v65_v35 }
  0x2b   :  { %v69_v41 = vadd.f32 %v68_v39, %v66_v37  ;;  %v70_v42 = vmul.f32 %v67_v38, %v62_v33  ;;  %v71_v43 = vmul.f32 %v67_v38, %v63_v34  ;;  %v73_v44 = vadd.f32 %v72_v40, %v66_v37 }
  0x2d   :  { %v82_v45 = vrot.slane %v71_v43, %v81_v36  ;;  %v86_v46 = vrot.slane %v73_v44, %v81_v36  ;;  %v91_v47 = vrot.slane %v70_v42, %v81_v36  ;;  %v96_v48 = vrot.slane %v69_v41, %v81_v36 }
  0x2f   :  { %v87_v49 = vsel %vm78_vm1, %v82_v45, %v86_v46 }
  0x30   :  { %v92_v50 = vsel %vm77_vm0, %v91_v47, %v87_v49 }
  0x31   :  { %v97_v51 = vsel %vm76_vm2, %v96_v48, %v92_v50 }
  0x32   :  { %98 = vst [vmem:[%s152_s2] sm:$0xf] %v97_v51 }
  0x33   :  { %103 = vsyncpa [#allocation3], 1 }

</bundles_post_ra>
